<compile_context>
chip_gen: v6e
topology: v6e:2x2x1
jax: 0.10.0
libtpu: 0.0.40
codegen_flags: <defaults>
</compile_context>

<pallas_src>
import functools

import jax
import jax.numpy as jnp
import numpy as np
from jax import lax
from jax.experimental import pallas as pl
from jax.experimental.pallas import tpu as pltpu


def _basic_block_kernel(x_ref, w_ref, b_ref, m_ref, out_ref, patch_ref, *, width):
    """Grid = (N, S): batch x spatial tiles (spatial on the lane axis).

    x_ref     : (1, C_in, H*W)      f32   whole image, resident across the s axis
    w_ref     : (C_out, 9*C_in)     bf16  pre-packed conv weights, K = (ky, kx, ci)
    b_ref     : (C_out, 1)          f32   bias
    m_ref     : (9, H*W)            f32   0/1 validity masks for the 9 taps
    out_ref   : (1, C_in+C_out, T)  f32   concat([x, relu(conv)]) for this tile
    patch_ref : (9*C_in, H*W)       bf16  scratch: im2col patch, built at s == 0
    """
    C_in, HW = x_ref.shape[1], x_ref.shape[2]
    T = out_ref.shape[2]
    PAD = width + 1
    s = pl.program_id(1)

    # Build the lane-dense im2col patch once per batch element (the input block
    # index is constant along the s axis, so the image stays resident in VMEM).
    @pl.when(s == 0)
    def _build_patch():
        x2d = x_ref[0]                                            # (C_in, HW) f32
        zp = jnp.zeros((C_in, PAD), dtype=x2d.dtype)
        xz = jnp.concatenate([zp, x2d, zp], axis=1)               # (C_in, HW + 2*PAD)
        taps = []
        for ky in range(3):
            for kx in range(3):
                off = PAD + (ky - 1) * width + (kx - 1)           # static lane offset
                shifted = xz[:, off:off + HW]                     # (C_in, HW)
                t = ky * 3 + kx
                taps.append(shifted * m_ref[t:t + 1, :])          # zero halo taps
        patch_ref[...] = jnp.concatenate(taps, axis=0).astype(patch_ref.dtype)

    # One fused MXU matmul per spatial tile: (C_out, 9*C_in) @ (9*C_in, T).
    start = pl.multiple_of(s * T, T)
    p_tile = patch_ref[:, pl.ds(start, T)]                        # (9*C_in, T) bf16
    acc = jnp.dot(w_ref[...], p_tile, preferred_element_type=jnp.float32)
    conv = jnp.maximum(acc + b_ref[...], 0.0)                     # (C_out, T) f32

    # torch.cat((x, relu(conv)), dim=1) for this tile: one lane-dense store.
    x_tile = x_ref[0, :, pl.ds(start, T)]                         # (C_in, T) f32
    out_ref[0] = jnp.concatenate([x_tile, conv], axis=0).astype(out_ref.dtype)


def basic_block_forward(x_nchw, weight, bias, *, lane_tile=128):
    """BasicBlock.forward: cat((x, relu(conv3x3(x))), dim=1). NCHW in / NCHW out."""
    N, C_in, H, W = x_nchw.shape
    C_out = weight.shape[0]
    HW = H * W
    C_tot = C_in + C_out

    # Spatial tile width on the lane axis (multiple of 128 keeps stores unmasked).
    T = lane_tile if (HW % lane_tile == 0) else HW
    S = HW // T

    # (N, C_in, H, W) -> (N, C_in, H*W): contiguous merge of trailing dims.
    x_flat = x_nchw.reshape(N, C_in, HW)

    # Pre-pack weights once per call: (C_out, C_in, 3, 3) -> (C_out, 9*C_in),
    # K ordered (ky, kx, ci); bf16 MXU operands, f32 accumulation in the kernel.
    w_mat = jnp.transpose(weight, (0, 2, 3, 1)).reshape(C_out, 9 * C_in)
    w_mat = w_mat.astype(jnp.bfloat16)
    b_col = bias.reshape(C_out, 1).astype(jnp.float32)

    # Host-precomputed 0/1 validity masks for the 9 taps (zero-padding halo),
    # flattened to the spatial-minor layout.  Tiny and resident in VMEM.
    yy, xx = np.meshgrid(np.arange(H), np.arange(W), indexing="ij")
    masks = []
    for ky in range(3):
        for kx in range(3):
            dy, dx = ky - 1, kx - 1
            valid = ((yy + dy >= 0) & (yy + dy < H) &
                     (xx + dx >= 0) & (xx + dx < W))
            masks.append(valid.reshape(HW))
    tap_mask = jnp.asarray(np.stack(masks).astype(np.float32))    # (9, HW)

    kernel = functools.partial(_basic_block_kernel, width=W)

    out_flat = pl.pallas_call(
        kernel,
        out_shape=jax.ShapeDtypeStruct((N, C_tot, HW), x_nchw.dtype),
        grid_spec=pltpu.PrefetchScalarGridSpec(
            num_scalar_prefetch=0,
            grid=(N, S),
            in_specs=[
                pl.BlockSpec((1, C_in, HW), lambda n, s: (n, 0, 0)),
                pl.BlockSpec((C_out, 9 * C_in), lambda n, s: (0, 0)),
                pl.BlockSpec((C_out, 1), lambda n, s: (0, 0)),
                pl.BlockSpec((9, HW), lambda n, s: (0, 0)),
            ],
            out_specs=pl.BlockSpec((1, C_tot, T), lambda n, s: (n, 0, s)),
            scratch_shapes=[pltpu.VMEM((9 * C_in, HW), jnp.bfloat16)],
        ),
        compiler_params=pltpu.CompilerParams(
            dimension_semantics=("parallel", "arbitrary")),
    )(x_flat, w_mat, b_col, tap_mask)

    # (N, C_tot, H*W) -> (N, C_tot, H, W): contiguous split of the trailing dim.
    return out_flat.reshape(N, C_tot, H, W)


def _reference(x_nchw, weight, bias, conv_dtype=None):
    """Pure-JAX reference of the PyTorch forward pass (NCHW).

    conv_dtype=None  -> exact f32 module semantics.
    conv_dtype=bf16  -> same operand rounding as the kernel's MXU dot (f32 accum).
    """
    xw = x_nchw if conv_dtype is None else x_nchw.astype(conv_dtype)
    ww = weight if conv_dtype is None else weight.astype(conv_dtype)
    conv = lax.conv_general_dilated(
        xw, ww,
        window_strides=(1, 1), padding=((1, 1), (1, 1)),
        dimension_numbers=("NCHW", "OIHW", "NCHW"),
        preferred_element_type=jnp.float32,
    ) + bias.reshape(1, -1, 1, 1)
    return jnp.concatenate([x_nchw, jnp.maximum(conv, 0.0)], axis=1)


if __name__ == "__main__":
    key = jax.random.PRNGKey(0)
    k_x, k_w, k_b = jax.random.split(key, 3)

    N, C_in, C_out, H, W = 2, 4, 8, 16, 16

    x = jax.random.normal(k_x, (N, C_in, H, W), dtype=jnp.float32)
    # Deterministic synthetic parameters (shapes per nn.Conv2d(C_in, C_out, 3))
    weight = jax.random.normal(k_w, (C_out, C_in, 3, 3), dtype=jnp.float32) * 0.1
    bias = jax.random.normal(k_b, (C_out,), dtype=jnp.float32) * 0.1

    fwd = jax.jit(basic_block_forward)
    out = jax.block_until_ready(fwd(x, weight, bias))
    assert out.shape == (N, C_in + C_out, H, W), out.shape

    # Tight check vs a reference that uses the same bf16 conv operands
    # (f32 accumulation): only accumulation-order noise remains.
    ref_bf16 = jax.block_until_ready(_reference(x, weight, bias, jnp.bfloat16))
    assert jnp.allclose(out, ref_bf16, atol=5e-3, rtol=5e-3), \
        float(jnp.max(jnp.abs(out - ref_bf16)))

    # Module-semantics check (f32 conv); tolerance relaxed because the kernel
    # feeds bf16 operands to the MXU (per v6e/v7x perf guidance).
    ref_f32 = jax.block_until_ready(_reference(x, weight, bias))
    assert jnp.allclose(out, ref_f32, atol=3e-2, rtol=3e-2), \
        float(jnp.max(jnp.abs(out - ref_f32)))

    print("KERNEL_OK")
</pallas_src>

<mosaic_0001>
module attributes {stable_mosaic.version = 11 : i64} {
  func.func @_basic_block_kernel(%arg0: i32, %arg1: i32, %arg2: memref<1x4x256xf32, #tpu.memory_space<vmem>>, %arg3: memref<8x36xbf16, #tpu.memory_space<vmem>>, %arg4: memref<8x1xf32, #tpu.memory_space<vmem>>, %arg5: memref<9x256xf32, #tpu.memory_space<vmem>>, %arg6: memref<1x12x128xf32, #tpu.memory_space<vmem>>, %arg7: memref<36x256xbf16, #tpu.memory_space<vmem>>) attributes {dimension_semantics = [#tpu.dimension_semantics<parallel>, #tpu.dimension_semantics<arbitrary>], iteration_bounds = array<i64: 2, 2>, scalar_prefetch = 0 : i64, scratch_operands = 1 : i64, tpu.core_type = #tpu.core_type<tc>, window_params = [{transform_indices = @transform_0, window_bounds = array<i64: 1, 4, 256>}, {pipeline_mode = #tpu.pipeline_mode<synchronous>, transform_indices = @transform_1, window_bounds = array<i64: 8, 36>}, {pipeline_mode = #tpu.pipeline_mode<synchronous>, transform_indices = @transform_2, window_bounds = array<i64: 8, 1>}, {pipeline_mode = #tpu.pipeline_mode<synchronous>, transform_indices = @transform_3, window_bounds = array<i64: 9, 256>}, {transform_indices = @transform_4, window_bounds = array<i64: 1, 12, 128>}]} {
    %c0_i32 = arith.constant 0 : i32
    %0 = arith.cmpi eq, %arg1, %c0_i32 : i32
    %1 = arith.extui %0 : i1 to i32
    %c0_i32_0 = arith.constant 0 : i32
    %2 = arith.cmpi ne, %1, %c0_i32_0 : i32
    scf.if %2 {
      %c0_11 = arith.constant 0 : index
      %c0_12 = arith.constant 0 : index
      %c0_13 = arith.constant 0 : index
      %21 = vector.load %arg2[%c0_11, %c0_12, %c0_13] : memref<1x4x256xf32, #tpu.memory_space<vmem>>, vector<1x4x256xf32>
      %22 = vector.shape_cast %21 : vector<1x4x256xf32> to vector<4x256xf32>
      %cst_14 = arith.constant 0.000000e+00 : f32
      %23 = vector.broadcast %cst_14 : f32 to vector<4x17xf32>
      %24 = tpu.concatenate %23, %22, %23 in 1 : vector<4x17xf32>, vector<4x256xf32>, vector<4x17xf32> -> vector<4x290xf32>
      %25 = vector.extract_strided_slice %24 {offsets = [0, 0], sizes = [4, 256], strides = [1, 1]} : vector<4x290xf32> to vector<4x256xf32>
      %c0_15 = arith.constant 0 : index
      %c0_16 = arith.constant 0 : index
      %26 = vector.load %arg5[%c0_15, %c0_16] : memref<9x256xf32, #tpu.memory_space<vmem>>, vector<1x256xf32>
      %27 = vector.broadcast %26 : vector<1x256xf32> to vector<4x256xf32>
      %28 = arith.mulf %25, %27 : vector<4x256xf32>
      %29 = vector.extract_strided_slice %24 {offsets = [0, 1], sizes = [4, 256], strides = [1, 1]} : vector<4x290xf32> to vector<4x256xf32>
      %c1 = arith.constant 1 : index
      %c0_17 = arith.constant 0 : index
      %30 = vector.load %arg5[%c1, %c0_17] : memref<9x256xf32, #tpu.memory_space<vmem>>, vector<1x256xf32>
      %31 = vector.broadcast %30 : vector<1x256xf32> to vector<4x256xf32>
      %32 = arith.mulf %29, %31 : vector<4x256xf32>
      %33 = vector.extract_strided_slice %24 {offsets = [0, 2], sizes = [4, 256], strides = [1, 1]} : vector<4x290xf32> to vector<4x256xf32>
      %c2 = arith.constant 2 : index
      %c0_18 = arith.constant 0 : index
      %34 = vector.load %arg5[%c2, %c0_18] : memref<9x256xf32, #tpu.memory_space<vmem>>, vector<1x256xf32>
      %35 = vector.broadcast %34 : vector<1x256xf32> to vector<4x256xf32>
      %36 = arith.mulf %33, %35 : vector<4x256xf32>
      %37 = vector.extract_strided_slice %24 {offsets = [0, 16], sizes = [4, 256], strides = [1, 1]} : vector<4x290xf32> to vector<4x256xf32>
      %c3 = arith.constant 3 : index
      %c0_19 = arith.constant 0 : index
      %38 = vector.load %arg5[%c3, %c0_19] : memref<9x256xf32, #tpu.memory_space<vmem>>, vector<1x256xf32>
      %39 = vector.broadcast %38 : vector<1x256xf32> to vector<4x256xf32>
      %40 = arith.mulf %37, %39 : vector<4x256xf32>
      %41 = vector.extract_strided_slice %24 {offsets = [0, 17], sizes = [4, 256], strides = [1, 1]} : vector<4x290xf32> to vector<4x256xf32>
      %c4 = arith.constant 4 : index
      %c0_20 = arith.constant 0 : index
      %42 = vector.load %arg5[%c4, %c0_20] : memref<9x256xf32, #tpu.memory_space<vmem>>, vector<1x256xf32>
      %43 = vector.broadcast %42 : vector<1x256xf32> to vector<4x256xf32>
      %44 = arith.mulf %41, %43 : vector<4x256xf32>
      %45 = vector.extract_strided_slice %24 {offsets = [0, 18], sizes = [4, 256], strides = [1, 1]} : vector<4x290xf32> to vector<4x256xf32>
      %c5 = arith.constant 5 : index
      %c0_21 = arith.constant 0 : index
      %46 = vector.load %arg5[%c5, %c0_21] : memref<9x256xf32, #tpu.memory_space<vmem>>, vector<1x256xf32>
      %47 = vector.broadcast %46 : vector<1x256xf32> to vector<4x256xf32>
      %48 = arith.mulf %45, %47 : vector<4x256xf32>
      %49 = vector.extract_strided_slice %24 {offsets = [0, 32], sizes = [4, 256], strides = [1, 1]} : vector<4x290xf32> to vector<4x256xf32>
      %c6 = arith.constant 6 : index
      %c0_22 = arith.constant 0 : index
      %50 = vector.load %arg5[%c6, %c0_22] : memref<9x256xf32, #tpu.memory_space<vmem>>, vector<1x256xf32>
      %51 = vector.broadcast %50 : vector<1x256xf32> to vector<4x256xf32>
      %52 = arith.mulf %49, %51 : vector<4x256xf32>
      %53 = vector.extract_strided_slice %24 {offsets = [0, 33], sizes = [4, 256], strides = [1, 1]} : vector<4x290xf32> to vector<4x256xf32>
      %c7 = arith.constant 7 : index
      %c0_23 = arith.constant 0 : index
      %54 = vector.load %arg5[%c7, %c0_23] : memref<9x256xf32, #tpu.memory_space<vmem>>, vector<1x256xf32>
      %55 = vector.broadcast %54 : vector<1x256xf32> to vector<4x256xf32>
      %56 = arith.mulf %53, %55 : vector<4x256xf32>
      %57 = vector.extract_strided_slice %24 {offsets = [0, 34], sizes = [4, 256], strides = [1, 1]} : vector<4x290xf32> to vector<4x256xf32>
      %c8 = arith.constant 8 : index
      %c0_24 = arith.constant 0 : index
      %58 = vector.load %arg5[%c8, %c0_24] : memref<9x256xf32, #tpu.memory_space<vmem>>, vector<1x256xf32>
      %59 = vector.broadcast %58 : vector<1x256xf32> to vector<4x256xf32>
      %60 = arith.mulf %57, %59 : vector<4x256xf32>
      %61 = tpu.concatenate %28, %32, %36, %40, %44, %48, %52, %56, %60 in 0 : vector<4x256xf32>, vector<4x256xf32>, vector<4x256xf32>, vector<4x256xf32>, vector<4x256xf32>, vector<4x256xf32>, vector<4x256xf32>, vector<4x256xf32>, vector<4x256xf32> -> vector<36x256xf32>
      %62 = arith.truncf %61 : vector<36x256xf32> to vector<36x256xbf16>
      %c0_25 = arith.constant 0 : index
      %c0_26 = arith.constant 0 : index
      %63 = vector.load %arg7[%c0_25, %c0_26] : memref<36x256xbf16, #tpu.memory_space<vmem>>, vector<36x256xbf16>
      tpu.vector_store %arg7[%c0_25, %c0_26], %62 {strides = array<i32>} : memref<36x256xbf16, #tpu.memory_space<vmem>>, vector<36x256xbf16>,
    } else {
    }
    %c128_i32 = arith.constant 128 : i32
    %3 = arith.muli %arg1, %c128_i32 : i32
    %4 = tpu.assume_multiple %3, 128 : i32
    %c0 = arith.constant 0 : index
    %5 = arith.index_cast %4 : i32 to index
    %6 = vector.load %arg7[%c0, %5] : memref<36x256xbf16, #tpu.memory_space<vmem>>, vector<36x128xbf16>
    %c0_1 = arith.constant 0 : index
    %c0_2 = arith.constant 0 : index
    %7 = vector.load %arg3[%c0_1, %c0_2] : memref<8x36xbf16, #tpu.memory_space<vmem>>, vector<8x36xbf16>
    %cst = arith.constant dense<0.000000e+00> : vector<8x128xf32>
    %8 = tpu.matmul %7, %6, %cst {dimension_numbers = #tpu.dot_dimension_numbers<[1], [0], [0], [1], [0, 0, 1, 1], [], []>} : vector<8x36xbf16>, vector<36x128xbf16>, vector<8x128xf32> -> vector<8x128xf32>
    %c0_3 = arith.constant 0 : index
    %c0_4 = arith.constant 0 : index
    %9 = vector.load %arg4[%c0_3, %c0_4] : memref<8x1xf32, #tpu.memory_space<vmem>>, vector<8x1xf32>
    %10 = vector.broadcast %9 : vector<8x1xf32> to vector<8x128xf32>
    %11 = arith.addf %8, %10 : vector<8x128xf32>
    %cst_5 = arith.constant 0.000000e+00 : f32
    %12 = vector.broadcast %cst_5 : f32 to vector<8x128xf32>
    %13 = arith.maximumf %11, %12 : vector<8x128xf32>
    %c0_6 = arith.constant 0 : index
    %c0_7 = arith.constant 0 : index
    %14 = arith.index_cast %4 : i32 to index
    %15 = vector.load %arg2[%c0_6, %c0_7, %14] : memref<1x4x256xf32, #tpu.memory_space<vmem>>, vector<1x4x128xf32>
    %16 = vector.shape_cast %15 : vector<1x4x128xf32> to vector<4x128xf32>
    %17 = tpu.concatenate %16, %13 in 0 : vector<4x128xf32>, vector<8x128xf32> -> vector<12x128xf32>
    %c0_8 = arith.constant 0 : index
    %c0_9 = arith.constant 0 : index
    %c0_10 = arith.constant 0 : index
    %18 = vector.load %arg6[%c0_8, %c0_9, %c0_10] : memref<1x12x128xf32, #tpu.memory_space<vmem>>, vector<1x12x128xf32>
    %19 = vector.shape_cast %18 : vector<1x12x128xf32> to vector<12x128xf32>
    %20 = vector.shape_cast %17 : vector<12x128xf32> to vector<1x12x128xf32>
    tpu.vector_store %arg6[%c0_8, %c0_9, %c0_10], %20 {strides = array<i32>} : memref<1x12x128xf32, #tpu.memory_space<vmem>>, vector<1x12x128xf32>,
    return
  }
  func.func @transform_0(%arg0: i32, %arg1: i32) -> (i32, i32, i32) {
    %c0_i32 = arith.constant 0 : i32
    %c0_i32_0 = arith.constant 0 : i32
    %c0_i32_1 = arith.constant 0 : i32
    return %arg0, %c0_i32, %c0_i32_0 : i32, i32, i32
  }
  func.func @transform_1(%arg0: i32, %arg1: i32) -> (i32, i32) {
    %c0_i32 = arith.constant 0 : i32
    %c0_i32_0 = arith.constant 0 : i32
    %c0_i32_1 = arith.constant 0 : i32
    return %c0_i32, %c0_i32_0 : i32, i32
  }
  func.func @transform_2(%arg0: i32, %arg1: i32) -> (i32, i32) {
    %c0_i32 = arith.constant 0 : i32
    %c0_i32_0 = arith.constant 0 : i32
    %c0_i32_1 = arith.constant 0 : i32
    return %c0_i32, %c0_i32_0 : i32, i32
  }
  func.func @transform_3(%arg0: i32, %arg1: i32) -> (i32, i32) {
    %c0_i32 = arith.constant 0 : i32
    %c0_i32_0 = arith.constant 0 : i32
    %c0_i32_1 = arith.constant 0 : i32
    return %c0_i32, %c0_i32_0 : i32, i32
  }
  func.func @transform_4(%arg0: i32, %arg1: i32) -> (i32, i32, i32) {
    %c0_i32 = arith.constant 0 : i32
    %c0_i32_0 = arith.constant 0 : i32
    return %arg0, %c0_i32, %arg1 : i32, i32, i32
  }
}

</mosaic_0001>

<bundles_post_ra>
// kernel: basic_block_forward.1
= control target key start
LH: loop header
LB: loop body
LE: loop exit
PB: predicated region body
PF: predicated region fallthrough
CT: control target
= control target key end

     0   :  { %s1073_s15 = smov 0   ;;  %s1075_s16 = smov 0   ;;  %s1279_s0 = inlined_call_operand.vmem [shape: f32[2,4,256], index: 0, kind: input, shape index: {}]   ;;  %s1280_s1 = inlined_call_operand.vmem [shape: bf16[8,36], index: 1, kind: input, shape index: {}]   ;;  %s1281_s2 = inlined_call_operand.vmem [shape: f32[8,1], index: 2, kind: input, shape index: {}]   ;;  %s1282_s3 = inlined_call_operand.vmem [shape: f32[9,256], index: 3, kind: input, shape index: {}]   ;;  %s1283_s4 = inlined_call_operand.vmem [shape: f32[2,12,256], index: 4, kind: output, shape index: {}]  }
   0x1   :  { %s1077_s17 = smov 0   ;;  %s1079_s18 = smov 0  }
   0x2   :  { %s1081_s19 = smov 0   ;;  %s1083_s20 = smov 0  }
   0x3   :  { %s1085_s21 = smov 0  }
   0x4 LB: > { %s23_s22 = sadd.s32 1, %s1019_s19  ;;  %s26_s23 = sadd.s32 1, %s1023_s20  ;;  %s1027_s21 = sphi %s1085_s21, %s14_s21   ;;  %s1023_s20 = sphi %s1083_s20, %s1290_s20   ;;  %s1019_s19 = sphi %s1081_s19, %s1289_s19   ;;  %s1015_s18 = sphi %s1079_s18, %s1288_s18   ;;  %s1011_s17 = sphi %s1077_s17, %s1287_s17   ;;  %s1007_s16 = sphi %s1075_s16, %s1286_s16   ;;  %s1003_s15 = sphi %s1073_s15, %s1285_s15  }
   0x5   : > { %p24_p0 = scmp.ge.s32.totalorder %s23_s22, 2  ;;  %s799_s24 = sadd.s32 4294967295, %s1027_s21  }
   0x6   : > { %p134_p1 = scmp.ne.s32.totalorder %s1007_s16, %s1003_s15  ;;  %p135_p2 = scmp.eq.s32.totalorder %s799_s24, 3 }
   0x7   : > { %s1292_s22 = smov (%p24_p0, %s23_s22), 0  ;;  %s1294_s23 = smov (!%p24_p0, %s26_s23), %s1023_s20 }
   0x8   : > { %s120_s25 = ssub.s32 %s1019_s19, %s1292_s22  ;;  %p28_p3 = scmp.ge.s32.totalorder %s1294_s23, 2 }
   0x9   : > { %p803_p4 = scmp.ge.s32.totalorder %s1027_s21, 1  ;;  %p1119_p5 = por %p135_p2, %p134_p1 }
   0xa   : > { %p176_p6 = scmp.lt.s32.totalorder %s1027_s21, 5  ;;  %s1296_s23 = smov (%p28_p3, %s1294_s23), 0 }
   0xb   : > { %s119_s27 = ssub.s32 %s1023_s20, %s1296_s23  ;;  %s124_s29 = sadd.s32 1, %s1007_s16 }
   0xc   : > { %p177_p7 = pnand %p803_p4, %p176_p6  ;;  %s121_s28 = sor.u32 %s120_s25, %s119_s27 }
   0xd   : > { %p122_p8 = scmp.eq.s32.totalorder %s121_s28, 0  ;;  %s198_s5 = sand.u32 (!%p177_p7), 1, %s1003_s15  }
   0xe   : > { %180 = sbr.rel (%p177_p7) target bundleno = 550 (0x226), region = 36  ;;  %p201_p9 = scmp.lt.s32.totalorder (!%p177_p7), %s1015_s18, 1 }
   0xf   : > { %s1130_s30 = scalar_select %p122_p8, %s1007_s16, %s124_s29  }
  0x10   : > { %s804_s6 = sshll.u32 (!%p177_p7), %s198_s5, 4  ;;  %p807_p10 = scmp.ne.s32.totalorder (!%p177_p7), %s1011_s17, 0 }
  0x11   : > { %s1140_s12 = scalar_lea.vmem (!%p177_p7), [#allocation3], %s804_s6 }
  0x13   : > { %s202_s7 = scalar_select %p201_p9, %s1015_s18, 1 }
  0x14   : > { %210 = sbr.rel (%p807_p10) target bundleno = 322 (0x142), region = 40  ;;  %s1029_s13 = smov (!%p807_p10), 17  }
  0x15   : > { %s833_s8 = sshll.u32 %s202_s7, 3  ;;  %s1030_s29 = smov (!%p807_p10), 1  }
  0x16   : > { %s1138_s11 = scalar_lea.vmem %s1279_s0, %s833_s8  ;;  %s1031_s5 = smov (!%p807_p10), 16  }
  0x17   : > { %s1032_s8 = smov (!%p807_p10), 18   ;;  %s1033_s14 = smov (!%p807_p10), 33  }
  0x18   : > { %s1034_s25 = smov (!%p807_p10), 2   ;;  %s1035_s6 = smov (!%p807_p10), 32  }
  0x19   : > { %v211_v0 = vld [vmem:[%s1138_s11] sm:$0xff]  ;;  %v227_v1 = vlaneseq  ;;  %v815_v25 = vld [vmem:[%s1282_s3 + $0x10] ss:$8 sm:$0x3]  ;;  %s1036_s7 = smov 34   ;;  %vm218_vm0 = vcmask 138240  }
  0x1a   : > { %214 = vrot.lane.b32.xlu0 %v211_v0, %s1029_s13  ;;  %v213_v2 = vcombine.high %v211_v0, %v211_v0  ;;  %v808_v4 = vld [vmem:[%s1282_s3 + $0x1] ss:$8 sm:$0x3]  ;;  %v810_v5 = vld [vmem:[%s1282_s3 + $0x3] ss:$8 sm:$0x3] }
  0x1b   : > { %v228_v3 = vshrl.u32 %v227_v1, 7  ;;  %v812_v10 = vld [vmem:[%s1282_s3 + $0x5] ss:$8 sm:$0x3]  ;;  %vm277_vm1 = vcmask 15360   ;;  %vm254_vm2 = vcmask 7168  }
  0x1c   : > { %v814_v13 = vld [vmem:[%s1282_s3 + $0x7] ss:$8 sm:$0x3]  ;;  %v809_v16 = vld [vmem:[%s1282_s3 + $0x2] ss:$8 sm:$0x3] }
  0x1d   : > { %v229_v6 = vsub.s32 0, %v228_v3  ;;  %v233_v7 = vsub.s32 1, %v228_v3  ;;  %v811_v19 = vld [vmem:[%s1282_s3 + $0x4] ss:$8 sm:$0x3]  ;;  %vm300_vm3 = vcmask 130048  }
  0x1e   : > { %216 = vrot.lane.b32.xlu0 %v213_v2, %s1029_s13  ;;  %v813_v22 = vld [vmem:[%s1282_s3 + $0x6] ss:$8 sm:$0x3]  ;;  %v225_v30 = vld [vmem:[%s1282_s3] ss:$8 sm:$0x3] }
  0x1f   : > { %v245_v8 = vrot.slane %v808_v4, %v229_v6  ;;  %v291_v9 = vrot.slane %v810_v5, %v229_v6  ;;  %v249_v11 = vrot.slane %v808_v4, %v233_v7  ;;  %v336_v12 = vrot.slane %v812_v10, %v229_v6  ;;  %s1038_s10 = smov 111   ;;  %s1040_s15 = smov 127  }
  0x20   : > { %v295_v14 = vrot.slane %v810_v5, %v233_v7  ;;  %v382_v15 = vrot.slane %v814_v13, %v229_v6  ;;  %v340_v17 = vrot.slane %v812_v10, %v233_v7  ;;  %v268_v18 = vrot.slane %v809_v16, %v229_v6  ;;  %s1041_s24 = smov 112   ;;  %s1043_s27 = smov 95  }
  0x21   : > { %250 = vrot.lane.b32.xlu1 %v245_v8, %s1030_s29  ;;  %v386_v20 = vrot.slane %v814_v13, %v233_v7  ;;  %v314_v21 = vrot.slane %v811_v19, %v229_v6  ;;  %v272_v23 = vrot.slane %v809_v16, %v233_v7  ;;  %v359_v24 = vrot.slane %v813_v22, %v229_v6  ;;  %s1044_s28 = smov 94  }
  0x22   : > { %296 = vrot.lane.b32.xlu0 %v291_v9, %s1031_s5  ;;  %v318_v26 = vrot.slane %v811_v19, %v233_v7  ;;  %v405_v27 = vrot.slane %v815_v25, %v229_v6  ;;  %v363_v28 = vrot.slane %v813_v22, %v233_v7  ;;  %v409_v29 = vrot.slane %v815_v25, %v233_v7 }
  0x23   : > { %v230_v31 = vrot.slane %v225_v30, %v229_v6  ;;  %v234_v34 = vrot.slane %v225_v30, %v233_v7  ;;  %vm368_vm4 = vcmask 261120   ;;  %vm345_vm5 = vcmask 146432  }
  0x24   : > { %vm391_vm6 = vcmask 269312   ;;  %vm414_vm7 = vcmask 277504   ;;  %vm434_vm8 = vcmask 1039360   ;;  %vm546_vm9 = vcmask 1043456  }
  0x25   : > { %252 = vrot.lane.b32.xlu1 %v249_v11, %s1030_s29  ;;  %vm448_vm10 = vcmask 1031168   ;;  %vm465_vm11 = vcmask 916480   ;;  %vm479_vm12 = vcmask 908288   ;;  %vm496_vm13 = vcmask 900096  }
  0x26   : > { %341 = vrot.lane.b32.xlu0 %v336_v12, %s1032_s8  ;;  %vm510_vm14 = vcmask 785408   ;;  %vm527_vm15 = vcmask 777216  }
  0x29   : > { %298 = vrot.lane.b32.xlu1 %v295_v14, %s1031_s5 }
  0x2a   : > { %387 = vrot.lane.b32.xlu0 %v382_v15, %s1033_s14 }
  0x2d   : > { %343 = vrot.lane.b32.xlu1 %v340_v17, %s1032_s8 }
  0x2e   : > { %273 = vrot.lane.b32.xlu0 %v268_v18, %s1034_s25 }
  0x31   : > { %389 = vrot.lane.b32.xlu1 %v386_v20, %s1033_s14  ;;  %s1039_s14 = smov 96  }
  0x32   : > { %319 = vrot.lane.b32.xlu0 %v314_v21, %s1029_s13 }
  0x35   : > { %275 = vrot.lane.b32.xlu1 %v272_v23, %s1034_s25  ;;  %s1042_s25 = smov 110  }
  0x36   : > { %364 = vrot.lane.b32.xlu0 %v359_v24, %s1035_s6 }
  0x39   : > { %321 = vrot.lane.b32.xlu1 %v318_v26, %s1029_s13  ;;  %s1037_s13 = smov 126  }
  0x3a   : > { %410 = vrot.lane.b32.xlu0 %v405_v27, %s1036_s7 }
  0x3d   : > { %366 = vrot.lane.b32.xlu1 %v363_v28, %s1035_s6 }
  0x41   : > { %412 = vrot.lane.b32.xlu1 %v409_v29, %s1036_s7 }
  0x8c   : > { %v215_v32 = vpop.permute.xlu0 %214 }
  0x8d   : > { %v1176_v33 = vsel %vm218_vm0, 0.0, %v215_v32 }
  0x8e   : > { %v1179_v35 = vmul.f32 %v230_v31, %v1176_v33 }
  0x90   : > { %v217_v36 = vpop.permute.xlu0 %216 }
  0x91   : > { %v1182_v37 = vsel %vm218_vm0, %v215_v32, %v217_v36  ;;  %v1194_v48 = vsel %vm218_vm0, %v217_v36, 0.0 }
  0x92   : > { %v1185_v38 = vmul.f32 %v234_v34, %v1182_v37 }
  0x93   : > { %v251_v39 = vpop.permute.xlu1 %250 }
  0x94   : > { %v297_v40 = vpop.permute.xlu0 %296  ;;  %v259_v6 = vmul.f32 %v251_v39, %v1176_v33 }
  0x95   : > { %v305_v16 = vmul.f32 %v297_v40, %v1176_v33 }
  0x96   : > { %v425_v15 = vrot.slane %v259_v6, 4 }
  0x97   : > { %v253_v41 = vpop.permute.xlu1 %252  ;;  %v456_v23 = vrot.slane %v305_v16, 4 }
  0x98   : > { %v1187_v42 = vpop.permute.xlu0 %341  ;;  %v255_v57 = vsel %vm254_vm2, %v251_v39, %v253_v41  ;;  %v261_v2 = vmul.f32 %v253_v41, %v1194_v48 }
  0x99   : > { %v260_v63 = vmul.f32 %v255_v57, %v1182_v37  ;;  %v350_v24 = vmul.f32 %v1187_v42, %v1176_v33 }
  0x9a   : > { %v427_v12 = vrot.slane %v261_v2, 4 }
  0x9b   : > { %v299_v43 = vpop.permute.xlu1 %298  ;;  %v426_v9 = vrot.slane %v260_v63, 4  ;;  %v487_v30 = vrot.slane %v350_v24, 4 }
  0x9c   : > { %v1189_v44 = vpop.permute.xlu0 %387  ;;  %v301_v3 = vsel %vm300_vm3, %v297_v40, %v299_v43  ;;  %v307_v13 = vmul.f32 %v299_v43, %v1194_v48 }
  0x9d   : > { %v306_v10 = vmul.f32 %v301_v3, %v1182_v37  ;;  %v943_v19 = vpack.i.bf16 %v426_v9, %v425_v15  ;;  %v396_v31 = vmul.f32 %v1189_v44, %v1176_v33 }
  0x9e   : > { %v458_v20 = vrot.slane %v307_v13, 4 }
  0x9f   : > { %v344_v45 = vpop.permute.xlu1 %343  ;;  %v457_v17 = vrot.slane %v306_v10, 4 }
  0xa0   : > { %v274_v46 = vpop.permute.xlu0 %273  ;;  %v346_v14 = vsel %vm345_vm5, %v1187_v42, %v344_v45  ;;  %v352_v21 = vmul.f32 %v344_v45, %v1194_v48  ;;  %v518_v42 = vrot.slane %v396_v31, 4 }
  0xa1   : > { %v282_v53 = vmul.f32 %v274_v46, %v1176_v33  ;;  %v351_v18 = vmul.f32 %v346_v14, %v1182_v37  ;;  %v948_v27 = vpack.i.bf16 %v457_v17, %v456_v23 }
  0xa2   : > { %v489_v28 = vrot.slane %v352_v21, 4 }
  0xa3   : > { %v1191_v47 = vpop.permute.xlu1 %389  ;;  %v488_v25 = vrot.slane %v351_v18, 4 }
  0xa4   : > { %v320_v50 = vpop.permute.xlu0 %319  ;;  %v392_v22 = vsel %vm391_vm6, %v1189_v44, %v1191_v47  ;;  %v398_v29 = vmul.f32 %v1191_v47, %v1194_v48 }
  0xa5   : > { %v327_v60 = vmul.f32 %v320_v50, %v1176_v33  ;;  %v397_v26 = vmul.f32 %v392_v22, %v1182_v37  ;;  %v953_v39 = vpack.i.bf16 %v488_v25, %v487_v30 }
  0xa6   : > { %v520_v40 = vrot.slane %v398_v29, 4 }
  0xa7   : > { %v276_v49 = vpop.permute.xlu1 %275  ;;  %v519_v34 = vrot.slane %v397_v26, 4 }
  0xa8   : > { %v278_v51 = vsel %vm277_vm1, %v274_v46, %v276_v49  ;;  %v284_v52 = vmul.f32 %v276_v49, %v1194_v48  ;;  %v365_v62 = vpop.permute.xlu0 %364 }
  0xa9   : > { %v283_v54 = vmul.f32 %v278_v51, %v1182_v37  ;;  %v373_v7 = vmul.f32 %v365_v62, %v1176_v33  ;;  %v958_v45 = vpack.i.bf16 %v519_v34, %v518_v42 }
  0xaa   : > { %446 = vrot.lane.b32.xlu1 %v284_v52, %s1037_s13 }
  0xab   : > { %v322_v55 = vpop.permute.xlu1 %321  ;;  %v928_v56 = vpack.i.bf16 %v283_v54, %v282_v53 }
  0xac   : > { %v323_v58 = vsel %vm218_vm0, %v320_v50, %v322_v55  ;;  %v329_v59 = vmul.f32 %v322_v55, %v1194_v48  ;;  %v411_v36 = vpop.permute.xlu0 %410  ;;  %vm541_vm0 = vcmask 769024  }
  0xad   : > { %v328_v61 = vmul.f32 %v323_v58, %v1182_v37  ;;  %929 = vrot.lane.b32.xlu0 %v928_v56, %s1037_s13  ;;  %v419_v44 = vmul.f32 %v411_v36, %v1176_v33 }
  0xae   : > { %477 = vrot.lane.b32.xlu1 %v329_v59, %s1038_s10 }
  0xaf   : > { %v367_v0 = vpop.permute.xlu1 %366  ;;  %v933_v1 = vpack.i.bf16 %v328_v61, %v327_v60 }
  0xb0   : > { %v369_v4 = vsel %vm368_vm4, %v365_v62, %v367_v0  ;;  %v375_v5 = vmul.f32 %v367_v0, %v1194_v48 }
  0xb1   : > { %v374_v8 = vmul.f32 %v369_v4, %v1182_v37  ;;  %934 = vrot.lane.b32.xlu0 %v933_v1, %s1038_s10 }
  0xb2   : > { %508 = vrot.lane.b32.xlu1 %v375_v5, %s1039_s14 }
  0xb3   : > { %v938_v11 = vpack.i.bf16 %v374_v8, %v373_v7  ;;  %v413_v32 = vpop.permute.xlu1 %412 }
  0xb4   : > { %v415_v41 = vsel %vm414_vm7, %v411_v36, %v413_v32  ;;  %v421_v46 = vmul.f32 %v413_v32, %v1194_v48 }
  0xb5   : > { %939 = vrot.lane.b32.xlu0 %v938_v11, %s1039_s14  ;;  %v420_v43 = vmul.f32 %v415_v41, %v1182_v37 }
  0xb6   : > { %432 = vrot.lane.b32.xlu1 %v427_v12, %s1040_s15 }
  0xb7   : > { %v963_v47 = vpack.i.bf16 %v420_v43, %v419_v44 }
  0xb9   : > { %944 = vrot.lane.b32.xlu0 %v943_v19, %s1040_s15 }
  0xba   : > { %463 = vrot.lane.b32.xlu1 %v458_v20, %s1041_s24 }
  0xbd   : > { %949 = vrot.lane.b32.xlu0 %v948_v27, %s1041_s24 }
  0xbe   : > { %494 = vrot.lane.b32.xlu1 %v489_v28, %s1042_s25 }
  0xc1   : > { %954 = vrot.lane.b32.xlu0 %v953_v39, %s1042_s25 }
  0xc2   : > { %525 = vrot.lane.b32.xlu1 %v520_v40, %s1043_s27 }
  0xc5   : > { %959 = vrot.lane.b32.xlu0 %v958_v45, %s1043_s27 }
  0xc6   : > { %539 = vrot.lane.b32.xlu1 %v421_v46, %s1044_s28 }
  0xc9   : > { %964 = vrot.lane.b32.xlu0 %v963_v47, %s1044_s28 }
 0x11c   : > { %v447_v49 = vpop.permute.xlu1 %446 }
 0x11f   : > { %v930_v50 = vpop.permute.xlu0 %929 }
 0x120   : > { %v478_v51 = vpop.permute.xlu1 %477  ;;  %v932_v58 = vunpack.i.h.bf16 %v930_v50  ;;  %v931_v33 = vunpack.i.l.bf16 %v930_v50 }
 0x122   : > { %v450_v6 = vsel %vm448_vm10, %v932_v58, %v447_v49  ;;  %v449_v7 = vsel %vm448_vm10, %v931_v33, %v932_v58 }
 0x123   : > { %v935_v52 = vpop.permute.xlu0 %934 }
 0x124   : > { %v509_v53 = vpop.permute.xlu1 %508  ;;  %v937_v3 = vunpack.i.h.bf16 %v935_v52  ;;  %v936_v4 = vunpack.i.l.bf16 %v935_v52 }
 0x126   : > { %v481_v14 = vsel %vm479_vm12, %v937_v3, %v478_v51  ;;  %v480_v15 = vsel %vm479_vm12, %v936_v4, %v937_v3 }
 0x127   : > { %v940_v54 = vpop.permute.xlu0 %939 }
 0x128   : > { %v433_v55 = vpop.permute.xlu1 %432  ;;  %v942_v16 = vunpack.i.h.bf16 %v940_v54  ;;  %v941_v17 = vunpack.i.l.bf16 %v940_v54 }
 0x12a   : > { %v512_v27 = vsel %vm510_vm14, %v942_v16, %v509_v53  ;;  %v511_v28 = vsel %vm510_vm14, %v941_v17, %v942_v16 }
 0x12b   : > { %v945_v56 = vpop.permute.xlu0 %944 }
 0x12c   : > { %v947_v37 = vunpack.i.h.bf16 %v945_v56  ;;  %v946_v57 = vunpack.i.l.bf16 %v945_v56  ;;  %v464_v48 = vpop.permute.xlu1 %463 }
 0x12e   : > { %v436_v59 = vsel %vm434_vm8, %v947_v37, %v433_v55  ;;  %v435_v60 = vsel %vm434_vm8, %v946_v57, %v947_v37 }
 0x12f   : > { %v548_v61 = vsel %vm546_vm9, %v1185_v38, %v436_v59  ;;  %v547_v62 = vsel %vm546_vm9, %v1179_v35, %v435_v60  ;;  %v950_v63 = vpop.permute.xlu0 %949 }
 0x130   : > { %v834_v0 = vpack.c.bf16 %v548_v61, %v547_v62  ;;  %v952_v1 = vunpack.i.h.bf16 %v950_v63  ;;  %v951_v2 = vunpack.i.l.bf16 %v950_v63  ;;  %v495_v5 = vpop.permute.xlu1 %494 }
 0x132   : > { %587 = vst [vmem:[#allocation2] sm:$0xff] %v834_v0  ;;  %v467_v8 = vsel %vm465_vm11, %v952_v1, %v464_v48  ;;  %v466_v9 = vsel %vm465_vm11, %v951_v2, %v952_v1 }
 0x133   : > { %v549_v10 = vsel %vm546_vm9, %v449_v7, %v466_v9  ;;  %v550_v38 = vsel %vm546_vm9, %v450_v6, %v467_v8  ;;  %v955_v35 = vpop.permute.xlu0 %954 }
 0x134   : > { %v835_v11 = vpack.c.bf16 %v550_v38, %v549_v10  ;;  %v957_v12 = vunpack.i.h.bf16 %v955_v35  ;;  %v956_v13 = vunpack.i.l.bf16 %v955_v35  ;;  %v526_v22 = vpop.permute.xlu1 %525 }
 0x136   : > { %588 = vst [vmem:[#allocation2 + $0x8] sm:$0xff] %v835_v11  ;;  %v498_v18 = vsel %vm496_vm13, %v957_v12, %v495_v5  ;;  %v497_v19 = vsel %vm496_vm13, %v956_v13, %v957_v12 }
 0x137   : > { %v551_v20 = vsel %vm546_vm9, %v480_v15, %v497_v19  ;;  %v552_v21 = vsel %vm546_vm9, %v481_v14, %v498_v18  ;;  %v960_v23 = vpop.permute.xlu0 %959 }
 0x138   : > { %v836_v24 = vpack.c.bf16 %v552_v21, %v551_v20  ;;  %v962_v25 = vunpack.i.h.bf16 %v960_v23  ;;  %v961_v26 = vunpack.i.l.bf16 %v960_v23  ;;  %v540_v41 = vpop.permute.xlu1 %539 }
 0x13a   : > { %589 = vst [vmem:[#allocation2 + $0x10] sm:$0xff] %v836_v24  ;;  %v529_v29 = vsel %vm527_vm15, %v962_v25, %v526_v22  ;;  %v528_v30 = vsel %vm527_vm15, %v961_v26, %v962_v25 }
 0x13b   : > { %v553_v31 = vsel %vm546_vm9, %v511_v28, %v528_v30  ;;  %v554_v32 = vsel %vm546_vm9, %v512_v27, %v529_v29  ;;  %v965_v34 = vpop.permute.xlu0 %964 }
 0x13c   : > { %v837_v36 = vpack.c.bf16 %v554_v32, %v553_v31  ;;  %v967_v39 = vunpack.i.h.bf16 %v965_v34  ;;  %v966_v40 = vunpack.i.l.bf16 %v965_v34 }
 0x13e   : > { %590 = vst [vmem:[#allocation2 + $0x18] sm:$0xff] %v837_v36  ;;  %v543_v42 = vsel %vm541_vm0, %v967_v39, %v540_v41  ;;  %v542_v43 = vsel %vm541_vm0, %v966_v40, %v967_v39 }
 0x13f   : > { %v838_v45 = vpack.c.bf16 %v543_v42, %v542_v43 }
 0x141   : > { %591 = vst [vmem:[#allocation2 + $0x20] sm:$0x33] %v838_v45 }
 0x142 PF: > { %s821_s29 = sshll.u32 %s1011_s17, 7  ;;  %v1045_v46 = vmov 0.0   ;;  %vm1046_vm1 = vmmov 0   ;;  %v603_v44 = vld [vmem:[%s1281_s2] sm:$0xff]  ;;  %v1047_v47 = vmov 0   ;;  %vm628_vm2 = vcmask 1041408  }
 0x143   : > { %843 = vmatprep.subr.bf16.mxu0 %v1045_v46  ;;  %s593_s5 = sshra.s32 %s821_s29, 7  ;;  %849 = vmatprep.mubr.msk.bf16.mxu0 %vm1046_vm1, %v1045_v46  ;;  %v602_v53 = vld [vmem:[%s1280_s1] sm:$0xf]  ;;  %vm624_vm3 = vcmask 293888   ;;  %vm679_vm4 = vcmask 1043456   ;;  %s829_s15 = sshll.u32 (%p1119_p5), %s1015_s18, 2 }
 0x144   : > { %s822_s8 = sshll.u32 %s593_s5, 2  ;;  %969 = vset.pattern.permute.xlu0 %v1047_v47  ;;  %s691_s24 = sadd.s32 (%p1119_p5), %s1011_s17, %s829_s15 }
 0x145   : > { %606 = vperm.xlu0 %969, %v603_v44   ;;  %s596_s9 = scalar_lea.vmem [#allocation2], %s822_s8  ;;  %s674_s14 = scalar_lea.vmem %s1138_s11, %s822_s8 }
 0x146   : > { %v675_v48 = vld [vmem:[%s674_s14] sm:$0xf]  ;;  %s830_s11 = sshll.u32 (%p1119_p5), %s691_s24, 3 }
 0x147   : > { %s693_s28 = scalar_lea.vmem (%p1119_p5), %s1283_s4, %s830_s11 }
 0x148   : > { %v970_v49 = vld [vmem:[%s596_s9 + $0x20] ss:$0 sps:$4 sm:$0x33]   ;;  %v971_v51 = vld [vmem:[%s596_s9 + $0x10] ss:$8 sps:$4 sm:$0xff]  }
 0x149   : > { %v630_v50 = vsel %vm628_vm2, %v970_v49, 0  ;;  %v972_v52 = vld [vmem:[%s596_s9] ss:$8 sps:$4 sm:$0xff]  }
 0x14a   : > { %844 = vmatpush3.bf16.msra.mxu0 %v630_v50 }
 0x14b   : > { %845 = vmatprep.subr.bf16.mxu0 %v1045_v46 }
 0x14e   : > { %846 = vmatpush3.bf16.msra.mxu0 %v971_v51 }
 0x14f   : > { %847 = vmatprep.subr.bf16.mxu0 %v1045_v46 }
 0x152   : > { %848 = vmatpush3.bf16.msra.mxu0 %v972_v52 }
 0x155   : > { %850 = vmatmul.mubr.msk.bf16.vlgmr.msra.gmra.mxu0 %vm624_vm3, %v602_v53 }
 0x1c0   : > { %v607_v54 = vpop.permute.xlu0 %606 }
 0x215   : > { %v666_v55 = vpop.f32.mrf.mxu0 }
 0x216   : > { %v667_v56 = vadd.f32 %v666_v55, %v607_v54 }
 0x217   : > { %v851_v37 = vpop.f32.mrf.mxu0 }
 0x218   : > { %v672_v57 = vmax.f32 %v667_v56, 0.0 }
 0x219   : > { %v669_v58 = vpop.f32.mrf.mxu0  ;;  %689 = sbr.rel (!%p1119_p5) target bundleno = 550 (0x226), region = 44 }
 0x21a   : > { %v677_v33 = vrot.slane %v672_v57, 4 }
 0x21b   : > { %v852_v59 = vpop.f32.mrf.mxu0 }
 0x21c   : > { %v680_v60 = vsel %vm679_vm4, %v675_v48, %v677_v33  ;;  %682 = vst [vmem:[%s1140_s12 + $0x8] sm:$0xf] %v677_v33 }
 0x21d   : > { %681 = vst [vmem:[%s1140_s12] sm:$0xff] %v680_v60 }
 0x223   : > { %v726_v62 = vld [vmem:[%s1140_s12 + $0x8] sm:$0xff] }
 0x224   : > { %v724_v61 = vld [vmem:[%s1140_s12] sm:$0xff]  ;;  %727 = vst [vmem:[%s693_s28 + $0x10] sm:$0xff] %v726_v62 }
 0x225   : > { %725 = vst [vmem:[%s693_s28] sm:$0xff] %v724_v61 }
 0x226 PF: > { %s14_s21 = sadd.s32 1, %s1027_s21   ;;  %s1285_s15 = smov %s1007_s16 }
 0x227   : > { %p11_p11 = scmp.ge.s32.totalorder %s14_s21, 6   ;;  %s1286_s16 = smov %s1130_s30 }
 0x228   : > { %s1287_s17 = smov %s1019_s19  ;;  %s1288_s18 = smov %s1023_s20 }
 0x229   : > { %s1289_s19 = smov %s1292_s22  ;;  %s1290_s20 = smov %s1296_s23 }
 0x22a   :  { %13 = sbr.rel (!%p11_p11) target bundleno = 4 (0x4), region = 118 }

</bundles_post_ra>
